<compile_context>
chip_gen: v7x
topology: tpu7x:2x2x1
jax: 0.10.0
libtpu: 0.0.40
codegen_flags: <defaults>
</compile_context>

<pallas_src>
import jax
import jax.numpy as jnp
from jax.experimental import pallas as pl
from jax.experimental.pallas import tpu as pltpu

_LANE = 128


def _round_up(n, m):
    return ((n + m - 1) // m) * m


def _goal_encoder_kernel(x_ref, w_ref, b_ref, o_ref):
    # x_ref: (tile_rows, K)       f32   (K = pack * input_size, tiny)
    # w_ref: (K, F_lane)          f32   (block-diagonal when pack > 1)
    # b_ref: (1, F_lane)          f32   (bias, lane-tiled pack times)
    # o_ref: (tile_rows, F_lane)  out_dtype
    x = x_ref[...]
    w = w_ref[...]
    acc = b_ref[...]                       # (1, F_lane), broadcasts over rows
    k = w_ref.shape[0]                     # static (2..8) -> fully unrolled on the VPU
    for i in range(k):
        acc = acc + x[:, i:i + 1] * w[i:i + 1, :]   # broadcast FMA, no MXU
    o_ref[...] = jnp.maximum(acc, 0.0).astype(o_ref.dtype)


def prepare_goal_encoder_params(weight, bias):
    """One-time parameter prep (do NOT call per forward).

    weight: (F, IN) f32 in PyTorch nn.Linear layout, bias: (F,) f32.

    If 128 % F == 0, pack = 128 // F batch rows share one 128-lane output row:
    weights become block-diagonal (pack*IN, 128), bias is lane-tiled to (1, 128),
    and the kernel's stores carry zero padding waste.  Otherwise the feature
    axis is zero-padded up to a multiple of 128.
    """
    F, IN = weight.shape
    w_t = weight.T.astype(jnp.float32)                      # (IN, F)
    b = bias.astype(jnp.float32)

    if F <= _LANE and _LANE % F == 0:
        pack = _LANE // F
        K = pack * IN
        w_p = jnp.zeros((K, _LANE), jnp.float32)
        for j in range(pack):
            w_p = w_p.at[j * IN:(j + 1) * IN, j * F:(j + 1) * F].set(w_t)
        b_p = jnp.tile(b[None, :], (1, pack))               # (1, 128)
        f_lane = _LANE
    else:
        pack = 1
        f_lane = _round_up(F, _LANE)
        w_p = jnp.zeros((IN, f_lane), jnp.float32).at[:, :F].set(w_t)
        b_p = jnp.zeros((1, f_lane), jnp.float32).at[0, :F].set(b)

    meta = dict(feature_dim=F, input_size=IN, pack=pack, f_lane=f_lane)
    return w_p, b_p, meta


def goal_encoder_forward(x, w_p, b_p, meta, *, out_dtype=jnp.float32,
                         tile_rows=1024):
    """x: (B, input_size).  Returns relu(x @ W^T + b): (B, feature_dim)."""
    B, IN = x.shape
    F = meta["feature_dim"]
    pack = meta["pack"]
    f_lane = meta["f_lane"]
    assert IN == meta["input_size"]
    x = x.astype(jnp.float32)

    # Pack `pack` batch rows per 128-lane kernel row and round the packed row
    # count up to the sublane quantum (8).  Both pads only touch the tiny
    # (B, IN) input array.
    rows = -(-B // pack) if pack > 1 else B
    rows_pad = _round_up(max(rows, 8), 8)
    b_pad = rows_pad * pack
    if b_pad != B:
        x = jnp.pad(x, ((0, b_pad - B), (0, 0)))
    xk = x.reshape(rows_pad, pack * IN) if pack > 1 else x
    K = xk.shape[1]

    # Fixed tile + cdiv grid: bounded VMEM for any B, pipelined HBM traffic,
    # and >1 grid step for v7x megacore at large B.  Ragged last block is
    # masked by Pallas.
    tile = min(tile_rows, rows_pad)
    grid = (pl.cdiv(rows_pad, tile),)

    out = pl.pallas_call(
        _goal_encoder_kernel,
        out_shape=jax.ShapeDtypeStruct((rows_pad, f_lane), out_dtype),
        grid=grid,
        in_specs=[
            pl.BlockSpec((tile, K), lambda i: (i, 0)),
            pl.BlockSpec((K, f_lane), lambda i: (0, 0)),    # VMEM-resident weights
            pl.BlockSpec((1, f_lane), lambda i: (0, 0)),    # VMEM-resident bias
        ],
        out_specs=pl.BlockSpec((tile, f_lane), lambda i: (i, 0)),
        # If xprof shows exposed output-writeback DMA at large B, consider
        # pipeline_mode=pl.Buffered(3) on out_specs (measure first).
        compiler_params=pltpu.CompilerParams(
            dimension_semantics=("parallel",),
        ),
    )(xk, w_p, b_p)

    if pack > 1:
        out = out.reshape(rows_pad * pack, F)   # free row-major unpack
        return out[:B] if rows_pad * pack != B else out

    if f_lane != F or rows_pad != B:
        # TODO(synk): have downstream consume the padded slab directly (extra
        # feature columns are exact zeros) instead of paying this extra HBM pass.
        return out[:B, :F]
    return out


if __name__ == "__main__":
    # GoalEncoder config: non-iGibson env -> input_size = 2; args.feature_dim = 32.
    INPUT_SIZE = 2
    FEATURE_DIM = 32
    BATCH = 8

    key = jax.random.PRNGKey(0)
    kx, kw, kb = jax.random.split(key, 3)

    # PyTorch nn.Linear-style uniform init: U(-1/sqrt(in), 1/sqrt(in)).
    bound = 1.0 / (INPUT_SIZE ** 0.5)
    weight = jax.random.uniform(
        kw, (FEATURE_DIM, INPUT_SIZE), jnp.float32, -bound, bound)
    bias = jax.random.uniform(kb, (FEATURE_DIM,), jnp.float32, -bound, bound)

    x = jax.random.normal(kx, (BATCH, INPUT_SIZE), jnp.float32)

    # One-time prep (transpose + block-diag lane packing), then per-call forward.
    w_p, b_p, meta = prepare_goal_encoder_params(weight, bias)
    out = goal_encoder_forward(x, w_p, b_p, meta)
    jax.block_until_ready(out)

    # Reference in plain JAX (same math as nn.Linear + ReLU).
    ref = jnp.maximum(x @ weight.T + bias, 0.0)
    assert out.shape == (BATCH, FEATURE_DIM), out.shape
    assert jnp.allclose(out, ref, atol=1e-5, rtol=1e-5), "mismatch vs reference"

    print("KERNEL_OK")
</pallas_src>

<mosaic_0001>
module attributes {stable_mosaic.version = 11 : i64} {
  func.func @_goal_encoder_kernel(%arg0: i32, %arg1: memref<8x8xf32, #tpu.memory_space<vmem>>, %arg2: memref<8x128xf32, #tpu.memory_space<vmem>>, %arg3: memref<1x128xf32, #tpu.memory_space<vmem>>, %arg4: memref<8x128xf32, #tpu.memory_space<vmem>>) attributes {dimension_semantics = [#tpu.dimension_semantics<parallel>], iteration_bounds = array<i64: 1>, scalar_prefetch = 0 : i64, scratch_operands = 0 : i64, tpu.core_type = #tpu.core_type<tc>, window_params = [{transform_indices = @transform_0, window_bounds = array<i64: 8, 8>}, {pipeline_mode = #tpu.pipeline_mode<synchronous>, transform_indices = @transform_1, window_bounds = array<i64: 8, 128>}, {pipeline_mode = #tpu.pipeline_mode<synchronous>, transform_indices = @transform_2, window_bounds = array<i64: 1, 128>}, {transform_indices = @transform_3, window_bounds = array<i64: 8, 128>}]} {
    %c0 = arith.constant 0 : index
    %c0_0 = arith.constant 0 : index
    %0 = vector.load %arg1[%c0, %c0_0] : memref<8x8xf32, #tpu.memory_space<vmem>>, vector<8x8xf32>
    %c0_1 = arith.constant 0 : index
    %c0_2 = arith.constant 0 : index
    %1 = vector.load %arg2[%c0_1, %c0_2] : memref<8x128xf32, #tpu.memory_space<vmem>>, vector<8x128xf32>
    %c0_3 = arith.constant 0 : index
    %c0_4 = arith.constant 0 : index
    %2 = vector.load %arg3[%c0_3, %c0_4] : memref<1x128xf32, #tpu.memory_space<vmem>>, vector<1x128xf32>
    %3 = vector.extract_strided_slice %0 {offsets = [0, 0], sizes = [8, 1], strides = [1, 1]} : vector<8x8xf32> to vector<8x1xf32>
    %4 = vector.extract_strided_slice %1 {offsets = [0, 0], sizes = [1, 128], strides = [1, 1]} : vector<8x128xf32> to vector<1x128xf32>
    %5 = vector.broadcast %3 : vector<8x1xf32> to vector<8x128xf32>
    %6 = vector.broadcast %4 : vector<1x128xf32> to vector<8x128xf32>
    %7 = arith.mulf %5, %6 : vector<8x128xf32>
    %8 = vector.broadcast %2 : vector<1x128xf32> to vector<8x128xf32>
    %9 = arith.addf %8, %7 : vector<8x128xf32>
    %10 = vector.extract_strided_slice %0 {offsets = [0, 1], sizes = [8, 1], strides = [1, 1]} : vector<8x8xf32> to vector<8x1xf32>
    %11 = vector.extract_strided_slice %1 {offsets = [1, 0], sizes = [1, 128], strides = [1, 1]} : vector<8x128xf32> to vector<1x128xf32>
    %12 = vector.broadcast %10 : vector<8x1xf32> to vector<8x128xf32>
    %13 = vector.broadcast %11 : vector<1x128xf32> to vector<8x128xf32>
    %14 = arith.mulf %12, %13 : vector<8x128xf32>
    %15 = arith.addf %9, %14 : vector<8x128xf32>
    %16 = vector.extract_strided_slice %0 {offsets = [0, 2], sizes = [8, 1], strides = [1, 1]} : vector<8x8xf32> to vector<8x1xf32>
    %17 = vector.extract_strided_slice %1 {offsets = [2, 0], sizes = [1, 128], strides = [1, 1]} : vector<8x128xf32> to vector<1x128xf32>
    %18 = vector.broadcast %16 : vector<8x1xf32> to vector<8x128xf32>
    %19 = vector.broadcast %17 : vector<1x128xf32> to vector<8x128xf32>
    %20 = arith.mulf %18, %19 : vector<8x128xf32>
    %21 = arith.addf %15, %20 : vector<8x128xf32>
    %22 = vector.extract_strided_slice %0 {offsets = [0, 3], sizes = [8, 1], strides = [1, 1]} : vector<8x8xf32> to vector<8x1xf32>
    %23 = vector.extract_strided_slice %1 {offsets = [3, 0], sizes = [1, 128], strides = [1, 1]} : vector<8x128xf32> to vector<1x128xf32>
    %24 = vector.broadcast %22 : vector<8x1xf32> to vector<8x128xf32>
    %25 = vector.broadcast %23 : vector<1x128xf32> to vector<8x128xf32>
    %26 = arith.mulf %24, %25 : vector<8x128xf32>
    %27 = arith.addf %21, %26 : vector<8x128xf32>
    %28 = vector.extract_strided_slice %0 {offsets = [0, 4], sizes = [8, 1], strides = [1, 1]} : vector<8x8xf32> to vector<8x1xf32>
    %29 = vector.extract_strided_slice %1 {offsets = [4, 0], sizes = [1, 128], strides = [1, 1]} : vector<8x128xf32> to vector<1x128xf32>
    %30 = vector.broadcast %28 : vector<8x1xf32> to vector<8x128xf32>
    %31 = vector.broadcast %29 : vector<1x128xf32> to vector<8x128xf32>
    %32 = arith.mulf %30, %31 : vector<8x128xf32>
    %33 = arith.addf %27, %32 : vector<8x128xf32>
    %34 = vector.extract_strided_slice %0 {offsets = [0, 5], sizes = [8, 1], strides = [1, 1]} : vector<8x8xf32> to vector<8x1xf32>
    %35 = vector.extract_strided_slice %1 {offsets = [5, 0], sizes = [1, 128], strides = [1, 1]} : vector<8x128xf32> to vector<1x128xf32>
    %36 = vector.broadcast %34 : vector<8x1xf32> to vector<8x128xf32>
    %37 = vector.broadcast %35 : vector<1x128xf32> to vector<8x128xf32>
    %38 = arith.mulf %36, %37 : vector<8x128xf32>
    %39 = arith.addf %33, %38 : vector<8x128xf32>
    %40 = vector.extract_strided_slice %0 {offsets = [0, 6], sizes = [8, 1], strides = [1, 1]} : vector<8x8xf32> to vector<8x1xf32>
    %41 = vector.extract_strided_slice %1 {offsets = [6, 0], sizes = [1, 128], strides = [1, 1]} : vector<8x128xf32> to vector<1x128xf32>
    %42 = vector.broadcast %40 : vector<8x1xf32> to vector<8x128xf32>
    %43 = vector.broadcast %41 : vector<1x128xf32> to vector<8x128xf32>
    %44 = arith.mulf %42, %43 : vector<8x128xf32>
    %45 = arith.addf %39, %44 : vector<8x128xf32>
    %46 = vector.extract_strided_slice %0 {offsets = [0, 7], sizes = [8, 1], strides = [1, 1]} : vector<8x8xf32> to vector<8x1xf32>
    %47 = vector.extract_strided_slice %1 {offsets = [7, 0], sizes = [1, 128], strides = [1, 1]} : vector<8x128xf32> to vector<1x128xf32>
    %48 = vector.broadcast %46 : vector<8x1xf32> to vector<8x128xf32>
    %49 = vector.broadcast %47 : vector<1x128xf32> to vector<8x128xf32>
    %50 = arith.mulf %48, %49 : vector<8x128xf32>
    %51 = arith.addf %45, %50 : vector<8x128xf32>
    %cst = arith.constant 0.000000e+00 : f32
    %52 = vector.broadcast %cst : f32 to vector<8x128xf32>
    %53 = arith.maximumf %51, %52 : vector<8x128xf32>
    %c0_5 = arith.constant 0 : index
    %c0_6 = arith.constant 0 : index
    %54 = vector.load %arg4[%c0_5, %c0_6] : memref<8x128xf32, #tpu.memory_space<vmem>>, vector<8x128xf32>
    tpu.vector_store %arg4[%c0_5, %c0_6], %53 {strides = array<i32>} : memref<8x128xf32, #tpu.memory_space<vmem>>, vector<8x128xf32>,
    return
  }
  func.func @transform_0(%arg0: i32) -> (i32, i32) {
    %c0_i32 = arith.constant 0 : i32
    %c0_i32_0 = arith.constant 0 : i32
    return %arg0, %c0_i32 : i32, i32
  }
  func.func @transform_1(%arg0: i32) -> (i32, i32) {
    %c0_i32 = arith.constant 0 : i32
    %c0_i32_0 = arith.constant 0 : i32
    %c0_i32_1 = arith.constant 0 : i32
    return %c0_i32, %c0_i32_0 : i32, i32
  }
  func.func @transform_2(%arg0: i32) -> (i32, i32) {
    %c0_i32 = arith.constant 0 : i32
    %c0_i32_0 = arith.constant 0 : i32
    %c0_i32_1 = arith.constant 0 : i32
    return %c0_i32, %c0_i32_0 : i32, i32
  }
  func.func @transform_3(%arg0: i32) -> (i32, i32) {
    %c0_i32 = arith.constant 0 : i32
    %c0_i32_0 = arith.constant 0 : i32
    return %arg0, %c0_i32 : i32, i32
  }
}

</mosaic_0001>

<bundles_post_ra>
// kernel: tpu_custom_call.1
= control target key start
LH: loop header
LB: loop body
LE: loop exit
PB: predicated region body
PF: predicated region fallthrough
CT: control target
= control target key end

     0   :  { %8 = vsyncpa [#allocation3], 0  ;;  %s310_s0 = inlined_call_operand.hbm [shape: f32[8,8], index: 0, kind: input, shape index: {}]   ;;  %s311_s1 = inlined_call_operand.hbm [shape: f32[8,128], index: 1, kind: input, shape index: {}]   ;;  %s312_s2 = inlined_call_operand.vmem [shape: f32[1,128], index: 2, kind: input, shape index: {}]   ;;  %s313_s3 = inlined_call_operand.hbm [shape: f32[8,128], index: 3, kind: output, shape index: {}]  }
   0x1   :  { %9 = vsyncpa [#allocation6], 0 }
   0x2   :  { %10 = vsyncpa [#allocation4], 0  ;;  %s240_s12 = smov [#allocation2]   ;;  %s241_s14 = smov [#allocation5]  }
   0x3   :  { %s17_s13 = sshll.u32 %s240_s12, 4  ;;  %s27_s15 = sshll.u32 %s241_s14, 4  ;;  %s18_s13 = int_to_ptr.vmem [resolvable:$true] %s17_s13  ;;  %s28_s15 = int_to_ptr.vmem [resolvable:$true] %s27_s15 }
   0x4   :  { %s168_s18 = scalar_lea.hbm %s310_s0, 128 }
   0x5   :  { %p169_p0 = scmp.ne.s32.totalorder %s310_s0, %s168_s18  ;;  %p172_p1 = scmp.lt.u32.totalorder %s168_s18, %s310_s0 }
   0x7   :  { %p174_p2 = pnand %p172_p1, %p169_p0 }
   0x9   :  { %177 = shalt.err (!%p174_p2)
}
   0xa   :  { %s178_s23 = scalar_lea.vmem %s18_s13, 128  ;;  %p183_p4 = scmp.lt.s32.totalorder %s18_s13, %s18_s13 }
   0xb   :  { %p179_p3 = scmp.ne.s32.totalorder %s18_s13, %s178_s23  ;;  %p184_p5 = scmp.lt.s32.totalorder %s178_s23, %s178_s23 }
   0xd   :  { %p185_p6 = por %p184_p5, %p183_p4 }
   0xf   :  { %p186_p7 = pnand %p185_p6, %p179_p3 }
  0x11   :  { %189 = shalt.err (!%p186_p7)
}
  0x12   :  { %20 = dma.hbm_to_vmem [thread:$0]  %s310_s0, 128, %s18_s13, [#allocation3]  }
  0x13   :  { %s190_s28 = scalar_lea.hbm %s311_s1, 128 }
  0x14   :  { %p191_p8 = scmp.ne.s32.totalorder %s311_s1, %s190_s28  ;;  %p194_p9 = scmp.lt.u32.totalorder %s190_s28, %s311_s1 }
  0x16   :  { %p196_p10 = pnand %p194_p9, %p191_p8 }
  0x18   :  { %199 = shalt.err (!%p196_p10)
}
  0x19   :  { %s200_s6 = scalar_lea.vmem %s28_s15, 128  ;;  %p205_p12 = scmp.lt.s32.totalorder %s28_s15, %s28_s15 }
  0x1a   :  { %p201_p11 = scmp.ne.s32.totalorder %s28_s15, %s200_s6  ;;  %p206_p13 = scmp.lt.s32.totalorder %s200_s6, %s200_s6 }
  0x1c   :  { %p207_p0 = por %p206_p13, %p205_p12 }
  0x1e   :  { %p208_p1 = pnand %p207_p0, %p201_p11 }
  0x20   :  { %211 = shalt.err (!%p208_p1)
}
  0x21   :  { %30 = dma.hbm_to_vmem [thread:$0]  %s311_s1, 128, %s28_s15, [#allocation6]  }
  0x22   :  { %234 = dma.done.wait [#allocation3], 128  }
  0x23   :  { %235 = vsyncadd [#allocation3], 4294967168 }
  0x24   :  { %236 = dma.done.wait [#allocation6], 128  }
  0x25   :  { %237 = vsyncadd [#allocation6], 4294967168  ;;  %v242_v0 = vmov 2   ;;  %v243_v1 = vmov 0   ;;  %v39_v2 = vld [vmem:[#allocation2] sm:$0xff]  ;;  %v244_v3 = vmov 3   ;;  %v47_v9 = vlaneseq }
  0x26   :  { %161 = vset.pattern.permute.xlu1 %v242_v0  ;;  %159 = vset.pattern.permute.xlu0 %v243_v1  ;;  %v245_v4 = vmov 1   ;;  %v246_v5 = vmov 4   ;;  %v247_v6 = vmov 5   ;;  %v248_v7 = vmov 6   ;;  %v40_v12 = vld [vmem:[#allocation5] sm:$0xff] }
  0x27   :  { %70 = vperm.xlu1 %161, %v39_v2   ;;  %44 = vperm.xlu0 %159, %v39_v2   ;;  %v249_v8 = vmov 7   ;;  %v48_v10 = vshrl.u32 %v47_v9, 7  ;;  %v147_v18 = vld [vmem:[%s312_s2] ss:$0 sm:$0xff]  ;;  %s250_s2 = smov [#allocation7]  }
  0x28   :  { %s137_s9 = sshll.u32 %s250_s2, 4  ;;  %s138_s9 = int_to_ptr.vmem [resolvable:$true] %s137_s9 }
  0x29   :  { %v49_v11 = vsub.s32 0, %v48_v10  ;;  %v65_v14 = vsub.s32 1, %v48_v10  ;;  %v75_v15 = vsub.s32 2, %v48_v10  ;;  %v85_v20 = vsub.s32 3, %v48_v10  ;;  %s212_s10 = scalar_lea.vmem %s138_s9, 128  ;;  %p217_p3 = scmp.lt.s32.totalorder %s138_s9, %s138_s9 }
  0x2a   :  { %v95_v22 = vsub.s32 4, %v48_v10  ;;  %v105_v27 = vsub.s32 5, %v48_v10  ;;  %v115_v34 = vsub.s32 6, %v48_v10  ;;  %v125_v43 = vsub.s32 7, %v48_v10  ;;  %p213_p2 = scmp.ne.s32.totalorder %s138_s9, %s212_s10  ;;  %p218_p4 = scmp.lt.s32.totalorder %s212_s10, %s212_s10 }
  0x2b   :  { %162 = vset.pattern.permute.xlu1 %v244_v3  ;;  %160 = vset.pattern.permute.xlu0 %v245_v4  ;;  %v50_v13 = vrot.slane %v40_v12, %v49_v11  ;;  %v66_v21 = vrot.slane %v40_v12, %v65_v14  ;;  %v76_v23 = vrot.slane %v40_v12, %v75_v15 }
  0x2c   :  { %80 = vperm.xlu1 %162, %v39_v2   ;;  %60 = vperm.xlu0 %160, %v39_v2   ;;  %v86_v28 = vrot.slane %v40_v12, %v85_v20  ;;  %v96_v30 = vrot.slane %v40_v12, %v95_v22  ;;  %v106_v33 = vrot.slane %v40_v12, %v105_v27  ;;  %p219_p5 = por %p218_p4, %p217_p3 }
  0x2d   :  { %v116_v42 = vrot.slane %v40_v12, %v115_v34  ;;  %v126_v48 = vrot.slane %v40_v12, %v125_v43 }
  0x2e   :  { %p220_p6 = pnand %p219_p5, %p213_p2 }
  0x30   :  { %163 = vset.pattern.permute.xlu1 %v246_v5  ;;  %164 = vset.pattern.permute.xlu0 %v247_v6 }
  0x31   :  { %90 = vperm.xlu1 %163, %v39_v2   ;;  %100 = vperm.xlu0 %164, %v39_v2  }
  0x35   :  { %165 = vset.pattern.permute.xlu1 %v248_v7  ;;  %167 = vset.pattern.permute.xlu0 %v249_v8 }
  0x36   :  { %110 = vperm.xlu1 %165, %v39_v2  }
  0x3a   :  { %166 = vset.pattern.permute.xlu1 %v249_v8 }
  0x3b   :  { %120 = vperm.xlu1 %166, %v39_v2  }
  0xa6   :  { %v71_v16 = vpop.permute.xlu1 %70  ;;  %v45_v17 = vpop.permute.xlu0 %44 }
  0xa7   :  { %v51_v19 = vmul.f32 %v50_v13, %v45_v17  ;;  %v77_v31 = vmul.f32 %v76_v23, %v71_v16 }
  0xa9   :  { %v58_v24 = vadd.f32 %v147_v18, %v51_v19 }
  0xab   :  { %v81_v25 = vpop.permute.xlu1 %80  ;;  %v61_v26 = vpop.permute.xlu0 %60 }
  0xac   :  { %v67_v29 = vmul.f32 %v66_v21, %v61_v26  ;;  %v87_v35 = vmul.f32 %v86_v28, %v81_v25 }
  0xae   :  { %v68_v32 = vadd.f32 %v67_v29, %v58_v24 }
  0xb0   :  { %v78_v36 = vadd.f32 %v77_v31, %v68_v32  ;;  %v91_v37 = vpop.permute.xlu1 %90  ;;  %v101_v38 = vpop.permute.xlu0 %100 }
  0xb1   :  { %v97_v39 = vmul.f32 %v96_v30, %v91_v37  ;;  %v107_v41 = vmul.f32 %v106_v33, %v101_v38 }
  0xb2   :  { %v88_v40 = vadd.f32 %v87_v35, %v78_v36 }
  0xb4   :  { %v98_v44 = vadd.f32 %v97_v39, %v88_v40 }
  0xb5   :  { %v111_v45 = vpop.permute.xlu1 %110 }
  0xb6   :  { %v108_v46 = vadd.f32 %v107_v41, %v98_v44  ;;  %v117_v47 = vmul.f32 %v116_v42, %v111_v45 }
  0xb8   :  { %v118_v50 = vadd.f32 %v117_v47, %v108_v46 }
  0xba   :  { %v121_v49 = vpop.permute.xlu1 %120 }
  0xbb   :  { %v127_v51 = vmul.f32 %v126_v48, %v121_v49 }
  0xbd   :  { %v128_v52 = vadd.f32 %v127_v51, %v118_v50 }
  0xbf   :  { %v129_v53 = vmax.f32 %v128_v52, 0.0 }
  0xc1   :  { %130 = vst [vmem:[#allocation7] sm:$0xff] %v129_v53 }
  0xc2   :  { %223 = shalt.err (!%p220_p6)
}
  0xc3   :  { %s224_s13 = scalar_lea.hbm %s313_s3, 128 }
  0xc4   :  { %p225_p7 = scmp.ne.s32.totalorder %s313_s3, %s224_s13  ;;  %p228_p8 = scmp.lt.u32.totalorder %s224_s13, %s313_s3 }
  0xc6   :  { %p230_p9 = pnand %p228_p8, %p225_p7 }
  0xc8   :  { %233 = shalt.err (!%p230_p9)
}
  0xc9   :  { %140 = dma.vmem_to_hbm [thread:$0]  %s138_s9, 128, %s313_s3, [#allocation4]  }
  0xca   :  { %238 = dma.done.wait [#allocation4], 128  }
  0xcb   :  { %239 = vsyncadd [#allocation4], 4294967168 }
  0xcc   :  { %144 = vsyncpa [#allocation3], 1 }
  0xcd   :  { %145 = vsyncpa [#allocation6], 1 }
  0xce   :  { %146 = vsyncpa [#allocation4], 1 }

</bundles_post_ra>
